<compile_context>
chip_gen: v7x
topology: tpu7x:2x2x1
jax: 0.10.0
libtpu: 0.0.40
codegen_flags: <defaults>
</compile_context>

<pallas_src>
import functools

import jax
import jax.numpy as jnp
from jax.experimental import pallas as pl
from jax.experimental.pallas import tpu as pltpu

_LANE = 128
_SUBLANE = 8


def _encoder_kernel(num_hidden_layers, *refs):
    """Fused MLP + Gaussian-sampling head (one batch tile per grid step).

    refs ordering:
      inputs : x, (w_i, b_i) * num_hidden_layers, w_mu, b_mu, w_lv, b_lv, eps
      outputs: z_ref, mu_ref, log_var_ref
    Weights arrive as bf16 (in_pad, out_pad); biases as f32 (1, out_pad).
    """
    n_in = 1 + 2 * num_hidden_layers + 4 + 1
    in_refs = refs[:n_in]
    z_ref, mu_ref, lv_ref = refs[n_in:]

    h = in_refs[0][...].astype(jnp.float32)  # (TB, F0_pad)

    idx = 1
    for _ in range(num_hidden_layers):
        w = in_refs[idx][...]        # bf16 (Fin_pad, Fout_pad)
        b = in_refs[idx + 1][...]    # f32  (1, Fout_pad)
        idx += 2
        h = jnp.dot(h.astype(jnp.bfloat16), w,
                    preferred_element_type=jnp.float32) + b
        h = jnp.maximum(h, 0.0)      # ReLU

    w_mu = in_refs[idx][...]
    b_mu = in_refs[idx + 1][...]
    w_lv = in_refs[idx + 2][...]
    b_lv = in_refs[idx + 3][...]
    eps = in_refs[idx + 4][...]

    hb = h.astype(jnp.bfloat16)
    mu = jnp.dot(hb, w_mu, preferred_element_type=jnp.float32) + b_mu
    lv = jnp.dot(hb, w_lv, preferred_element_type=jnp.float32) + b_lv
    z = mu + jnp.exp(lv * 0.5) * eps  # reparameterization trick

    z_ref[...] = z
    mu_ref[...] = mu
    lv_ref[...] = lv


def _round_up(n, m):
    return ((n + m - 1) // m) * m


def _pad2d(arr, rows, cols):
    r, c = arr.shape
    return jnp.pad(arr, ((0, rows - r), (0, cols - c)))


def encoder_forward(x, hidden_params, mu_params, lv_params, eps, *,
                    block_batch=256):
    """hidden_params: list of (W, b) with W: (in, out), b: (1, out).

    Returns (z, mu, log_var), each (batch, latent) float32.
    """
    num_hidden = len(hidden_params)
    batch, d_in = x.shape
    latent = mu_params[0].shape[1]

    # Lane-pad every feature width to a multiple of 128.
    dims = [d_in] + [w.shape[1] for w, _ in hidden_params]
    dims_pad = [_round_up(d, _LANE) for d in dims]
    latent_pad = _round_up(latent, _LANE)

    # Batch tiling: TB is a sublane multiple; batch is zero-padded to TB*n.
    tb = min(block_batch, _round_up(batch, _SUBLANE))
    tb = _round_up(tb, _SUBLANE)
    n_blocks = pl.cdiv(batch, tb)
    batch_pad = n_blocks * tb

    x_pad = _pad2d(x.astype(jnp.float32), batch_pad, dims_pad[0])
    eps_pad = _pad2d(eps.astype(jnp.float32), batch_pad, latent_pad)

    inputs = [x_pad]
    in_specs = [pl.BlockSpec((tb, dims_pad[0]), lambda i: (i, 0))]

    # Hidden layers: weights (bf16) and biases (f32), VMEM-resident blocks.
    for li, (w, b) in enumerate(hidden_params):
        kin, kout = dims_pad[li], dims_pad[li + 1]
        inputs.append(_pad2d(w, kin, kout).astype(jnp.bfloat16))
        in_specs.append(pl.BlockSpec((kin, kout), lambda i: (0, 0)))
        inputs.append(_pad2d(b, 1, kout).astype(jnp.float32))
        in_specs.append(pl.BlockSpec((1, kout), lambda i: (0, 0)))

    # Gaussian-sampling head (mu, log_var).
    k_last = dims_pad[-1]
    for w, b in (mu_params, lv_params):
        inputs.append(_pad2d(w, k_last, latent_pad).astype(jnp.bfloat16))
        in_specs.append(pl.BlockSpec((k_last, latent_pad), lambda i: (0, 0)))
        inputs.append(_pad2d(b, 1, latent_pad).astype(jnp.float32))
        in_specs.append(pl.BlockSpec((1, latent_pad), lambda i: (0, 0)))

    inputs.append(eps_pad)
    in_specs.append(pl.BlockSpec((tb, latent_pad), lambda i: (i, 0)))

    out_shape = tuple(
        jax.ShapeDtypeStruct((batch_pad, latent_pad), jnp.float32)
        for _ in range(3)
    )
    out_specs = tuple(
        pl.BlockSpec((tb, latent_pad), lambda i: (i, 0)) for _ in range(3)
    )

    kernel = functools.partial(_encoder_kernel, num_hidden)

    z, mu, lv = pl.pallas_call(
        kernel,
        grid=(n_blocks,),
        out_shape=out_shape,
        in_specs=in_specs,
        out_specs=out_specs,
        compiler_params=pltpu.CompilerParams(
            dimension_semantics=("parallel",)),
    )(*inputs)

    return (z[:batch, :latent], mu[:batch, :latent], lv[:batch, :latent])


def _init_linear(key, in_features, out_features):
    """Deterministic PyTorch-style uniform init; returns W:(in,out), b:(1,out)."""
    k_w, k_b = jax.random.split(key)
    bound = 1.0 / jnp.sqrt(jnp.float32(in_features))
    # PyTorch stores (out, in); transpose to (in, out) for the kernel layout.
    w_torch = jax.random.uniform(
        k_w, (out_features, in_features), jnp.float32, -bound, bound
    )
    b = jax.random.uniform(k_b, (out_features,), jnp.float32, -bound, bound)
    return w_torch.T, b.reshape(1, out_features)


def _reference(x, hidden_params, mu_params, lv_params, eps):
    """Pure-JAX reference with the same bf16 weight/activation quantization."""
    h = x.astype(jnp.float32)
    for w, b in hidden_params:
        h = jnp.dot(h.astype(jnp.bfloat16), w.astype(jnp.bfloat16),
                    preferred_element_type=jnp.float32) + b
        h = jnp.maximum(h, 0.0)
    hb = h.astype(jnp.bfloat16)
    mu = jnp.dot(hb, mu_params[0].astype(jnp.bfloat16),
                 preferred_element_type=jnp.float32) + mu_params[1]
    lv = jnp.dot(hb, lv_params[0].astype(jnp.bfloat16),
                 preferred_element_type=jnp.float32) + lv_params[1]
    z = mu + jnp.exp(lv * 0.5) * eps
    return z, mu, lv


if __name__ == "__main__":
    # dimensions = [input_dim, hidden_dims..., latent_dim]
    dimensions = [32, 64, 32, 16]
    hidden_dims = dimensions[:-1]   # [32, 64, 32]
    latent_dim = dimensions[-1]     # 16
    batch = 64                      # small demo batch; grid gets 2 steps (TB=32)

    key = jax.random.PRNGKey(0)
    keys = jax.random.split(key, 2 + (len(hidden_dims) - 1) + 2)

    x = jax.random.normal(keys[0], (batch, hidden_dims[0]), jnp.float32)

    # Hidden linear layers: hidden_dims[i] -> hidden_dims[i+1]
    hidden_params = []
    for i in range(len(hidden_dims) - 1):
        hidden_params.append(
            _init_linear(keys[1 + i], hidden_dims[i], hidden_dims[i + 1])
        )

    # GaussianSampling head: hidden_dims[-1] -> latent_dim (mu and log_var)
    mu_params = _init_linear(keys[len(hidden_dims)], hidden_dims[-1], latent_dim)
    lv_params = _init_linear(keys[len(hidden_dims) + 1], hidden_dims[-1], latent_dim)

    # eps ~ N(0,1) replaces torch.randn inside reparameterize (host-side).
    eps = jax.random.normal(keys[-1], (batch, latent_dim), jnp.float32)

    z, mu, log_var = encoder_forward(
        x, hidden_params, mu_params, lv_params, eps, block_batch=32
    )
    jax.block_until_ready((z, mu, log_var))

    # Sanity check against a pure-JAX reference (same bf16 quantization).
    z_ref, mu_ref, lv_ref = _reference(x, hidden_params, mu_params, lv_params, eps)
    assert jnp.allclose(mu, mu_ref, atol=1e-4, rtol=1e-4), "mu mismatch"
    assert jnp.allclose(log_var, lv_ref, atol=1e-4, rtol=1e-4), "log_var mismatch"
    assert jnp.allclose(z, z_ref, atol=1e-4, rtol=1e-4), "z mismatch"

    print("KERNEL_OK")
</pallas_src>

<mosaic_0001>
module attributes {stable_mosaic.version = 11 : i64} {
  func.func @_encoder_kernel(%arg0: i32, %arg1: memref<32x128xf32, #tpu.memory_space<vmem>>, %arg2: memref<128x128xbf16, #tpu.memory_space<vmem>>, %arg3: memref<1x128xf32, #tpu.memory_space<vmem>>, %arg4: memref<128x128xbf16, #tpu.memory_space<vmem>>, %arg5: memref<1x128xf32, #tpu.memory_space<vmem>>, %arg6: memref<128x128xbf16, #tpu.memory_space<vmem>>, %arg7: memref<1x128xf32, #tpu.memory_space<vmem>>, %arg8: memref<128x128xbf16, #tpu.memory_space<vmem>>, %arg9: memref<1x128xf32, #tpu.memory_space<vmem>>, %arg10: memref<32x128xf32, #tpu.memory_space<vmem>>, %arg11: memref<32x128xf32, #tpu.memory_space<vmem>>, %arg12: memref<32x128xf32, #tpu.memory_space<vmem>>, %arg13: memref<32x128xf32, #tpu.memory_space<vmem>>) attributes {dimension_semantics = [#tpu.dimension_semantics<parallel>], iteration_bounds = array<i64: 2>, scalar_prefetch = 0 : i64, scratch_operands = 0 : i64, tpu.core_type = #tpu.core_type<tc>, window_params = [{transform_indices = @transform_0, window_bounds = array<i64: 32, 128>}, {pipeline_mode = #tpu.pipeline_mode<synchronous>, transform_indices = @transform_1, window_bounds = array<i64: 128, 128>}, {pipeline_mode = #tpu.pipeline_mode<synchronous>, transform_indices = @transform_2, window_bounds = array<i64: 1, 128>}, {pipeline_mode = #tpu.pipeline_mode<synchronous>, transform_indices = @transform_3, window_bounds = array<i64: 128, 128>}, {pipeline_mode = #tpu.pipeline_mode<synchronous>, transform_indices = @transform_4, window_bounds = array<i64: 1, 128>}, {pipeline_mode = #tpu.pipeline_mode<synchronous>, transform_indices = @transform_5, window_bounds = array<i64: 128, 128>}, {pipeline_mode = #tpu.pipeline_mode<synchronous>, transform_indices = @transform_6, window_bounds = array<i64: 1, 128>}, {pipeline_mode = #tpu.pipeline_mode<synchronous>, transform_indices = @transform_7, window_bounds = array<i64: 128, 128>}, {pipeline_mode = #tpu.pipeline_mode<synchronous>, transform_indices = @transform_8, window_bounds = array<i64: 1, 128>}, {transform_indices = @transform_9, window_bounds = array<i64: 32, 128>}, {transform_indices = @transform_10, window_bounds = array<i64: 32, 128>}, {transform_indices = @transform_11, window_bounds = array<i64: 32, 128>}, {transform_indices = @transform_12, window_bounds = array<i64: 32, 128>}]} {
    %c0 = arith.constant 0 : index
    %c0_0 = arith.constant 0 : index
    %0 = vector.load %arg1[%c0, %c0_0] : memref<32x128xf32, #tpu.memory_space<vmem>>, vector<32x128xf32>
    %c0_1 = arith.constant 0 : index
    %c0_2 = arith.constant 0 : index
    %1 = vector.load %arg2[%c0_1, %c0_2] : memref<128x128xbf16, #tpu.memory_space<vmem>>, vector<128x128xbf16>
    %c0_3 = arith.constant 0 : index
    %c0_4 = arith.constant 0 : index
    %2 = vector.load %arg3[%c0_3, %c0_4] : memref<1x128xf32, #tpu.memory_space<vmem>>, vector<1x128xf32>
    %3 = arith.truncf %0 : vector<32x128xf32> to vector<32x128xbf16>
    %cst = arith.constant dense<0.000000e+00> : vector<32x128xf32>
    %4 = tpu.matmul %3, %1, %cst {dimension_numbers = #tpu.dot_dimension_numbers<[1], [0], [0], [1], [0, 0, 1, 1], [], []>} : vector<32x128xbf16>, vector<128x128xbf16>, vector<32x128xf32> -> vector<32x128xf32>
    %5 = vector.broadcast %2 : vector<1x128xf32> to vector<32x128xf32>
    %6 = arith.addf %4, %5 : vector<32x128xf32>
    %cst_5 = arith.constant 0.000000e+00 : f32
    %7 = vector.broadcast %cst_5 : f32 to vector<32x128xf32>
    %8 = arith.maximumf %6, %7 : vector<32x128xf32>
    %c0_6 = arith.constant 0 : index
    %c0_7 = arith.constant 0 : index
    %9 = vector.load %arg4[%c0_6, %c0_7] : memref<128x128xbf16, #tpu.memory_space<vmem>>, vector<128x128xbf16>
    %c0_8 = arith.constant 0 : index
    %c0_9 = arith.constant 0 : index
    %10 = vector.load %arg5[%c0_8, %c0_9] : memref<1x128xf32, #tpu.memory_space<vmem>>, vector<1x128xf32>
    %11 = arith.truncf %8 : vector<32x128xf32> to vector<32x128xbf16>
    %cst_10 = arith.constant dense<0.000000e+00> : vector<32x128xf32>
    %12 = tpu.matmul %11, %9, %cst_10 {dimension_numbers = #tpu.dot_dimension_numbers<[1], [0], [0], [1], [0, 0, 1, 1], [], []>} : vector<32x128xbf16>, vector<128x128xbf16>, vector<32x128xf32> -> vector<32x128xf32>
    %13 = vector.broadcast %10 : vector<1x128xf32> to vector<32x128xf32>
    %14 = arith.addf %12, %13 : vector<32x128xf32>
    %cst_11 = arith.constant 0.000000e+00 : f32
    %15 = vector.broadcast %cst_11 : f32 to vector<32x128xf32>
    %16 = arith.maximumf %14, %15 : vector<32x128xf32>
    %c0_12 = arith.constant 0 : index
    %c0_13 = arith.constant 0 : index
    %17 = vector.load %arg6[%c0_12, %c0_13] : memref<128x128xbf16, #tpu.memory_space<vmem>>, vector<128x128xbf16>
    %c0_14 = arith.constant 0 : index
    %c0_15 = arith.constant 0 : index
    %18 = vector.load %arg7[%c0_14, %c0_15] : memref<1x128xf32, #tpu.memory_space<vmem>>, vector<1x128xf32>
    %c0_16 = arith.constant 0 : index
    %c0_17 = arith.constant 0 : index
    %19 = vector.load %arg8[%c0_16, %c0_17] : memref<128x128xbf16, #tpu.memory_space<vmem>>, vector<128x128xbf16>
    %c0_18 = arith.constant 0 : index
    %c0_19 = arith.constant 0 : index
    %20 = vector.load %arg9[%c0_18, %c0_19] : memref<1x128xf32, #tpu.memory_space<vmem>>, vector<1x128xf32>
    %c0_20 = arith.constant 0 : index
    %c0_21 = arith.constant 0 : index
    %21 = vector.load %arg10[%c0_20, %c0_21] : memref<32x128xf32, #tpu.memory_space<vmem>>, vector<32x128xf32>
    %22 = arith.truncf %16 : vector<32x128xf32> to vector<32x128xbf16>
    %cst_22 = arith.constant dense<0.000000e+00> : vector<32x128xf32>
    %23 = tpu.matmul %22, %17, %cst_22 {dimension_numbers = #tpu.dot_dimension_numbers<[1], [0], [0], [1], [0, 0, 1, 1], [], []>} : vector<32x128xbf16>, vector<128x128xbf16>, vector<32x128xf32> -> vector<32x128xf32>
    %24 = vector.broadcast %18 : vector<1x128xf32> to vector<32x128xf32>
    %25 = arith.addf %23, %24 : vector<32x128xf32>
    %cst_23 = arith.constant dense<0.000000e+00> : vector<32x128xf32>
    %26 = tpu.matmul %22, %19, %cst_23 {dimension_numbers = #tpu.dot_dimension_numbers<[1], [0], [0], [1], [0, 0, 1, 1], [], []>} : vector<32x128xbf16>, vector<128x128xbf16>, vector<32x128xf32> -> vector<32x128xf32>
    %27 = vector.broadcast %20 : vector<1x128xf32> to vector<32x128xf32>
    %28 = arith.addf %26, %27 : vector<32x128xf32>
    %cst_24 = arith.constant 5.000000e-01 : f32
    %29 = vector.broadcast %cst_24 : f32 to vector<32x128xf32>
    %30 = arith.mulf %28, %29 : vector<32x128xf32>
    %31 = math.exp %30 : vector<32x128xf32>
    %32 = arith.mulf %31, %21 : vector<32x128xf32>
    %33 = arith.addf %25, %32 : vector<32x128xf32>
    %c0_25 = arith.constant 0 : index
    %c0_26 = arith.constant 0 : index
    %34 = vector.load %arg11[%c0_25, %c0_26] : memref<32x128xf32, #tpu.memory_space<vmem>>, vector<32x128xf32>
    tpu.vector_store %arg11[%c0_25, %c0_26], %33 {strides = array<i32>} : memref<32x128xf32, #tpu.memory_space<vmem>>, vector<32x128xf32>,
    %c0_27 = arith.constant 0 : index
    %c0_28 = arith.constant 0 : index
    %35 = vector.load %arg12[%c0_27, %c0_28] : memref<32x128xf32, #tpu.memory_space<vmem>>, vector<32x128xf32>
    tpu.vector_store %arg12[%c0_27, %c0_28], %25 {strides = array<i32>} : memref<32x128xf32, #tpu.memory_space<vmem>>, vector<32x128xf32>,
    %c0_29 = arith.constant 0 : index
    %c0_30 = arith.constant 0 : index
    %36 = vector.load %arg13[%c0_29, %c0_30] : memref<32x128xf32, #tpu.memory_space<vmem>>, vector<32x128xf32>
    tpu.vector_store %arg13[%c0_29, %c0_30], %28 {strides = array<i32>} : memref<32x128xf32, #tpu.memory_space<vmem>>, vector<32x128xf32>,
    return
  }
  func.func @transform_0(%arg0: i32) -> (i32, i32) {
    %c0_i32 = arith.constant 0 : i32
    %c0_i32_0 = arith.constant 0 : i32
    return %arg0, %c0_i32 : i32, i32
  }
  func.func @transform_1(%arg0: i32) -> (i32, i32) {
    %c0_i32 = arith.constant 0 : i32
    %c0_i32_0 = arith.constant 0 : i32
    %c0_i32_1 = arith.constant 0 : i32
    return %c0_i32, %c0_i32_0 : i32, i32
  }
  func.func @transform_2(%arg0: i32) -> (i32, i32) {
    %c0_i32 = arith.constant 0 : i32
    %c0_i32_0 = arith.constant 0 : i32
    %c0_i32_1 = arith.constant 0 : i32
    return %c0_i32, %c0_i32_0 : i32, i32
  }
  func.func @transform_3(%arg0: i32) -> (i32, i32) {
    %c0_i32 = arith.constant 0 : i32
    %c0_i32_0 = arith.constant 0 : i32
    %c0_i32_1 = arith.constant 0 : i32
    return %c0_i32, %c0_i32_0 : i32, i32
  }
  func.func @transform_4(%arg0: i32) -> (i32, i32) {
    %c0_i32 = arith.constant 0 : i32
    %c0_i32_0 = arith.constant 0 : i32
    %c0_i32_1 = arith.constant 0 : i32
    return %c0_i32, %c0_i32_0 : i32, i32
  }
  func.func @transform_5(%arg0: i32) -> (i32, i32) {
    %c0_i32 = arith.constant 0 : i32
    %c0_i32_0 = arith.constant 0 : i32
    %c0_i32_1 = arith.constant 0 : i32
    return %c0_i32, %c0_i32_0 : i32, i32
  }
  func.func @transform_6(%arg0: i32) -> (i32, i32) {
    %c0_i32 = arith.constant 0 : i32
    %c0_i32_0 = arith.constant 0 : i32
    %c0_i32_1 = arith.constant 0 : i32
    return %c0_i32, %c0_i32_0 : i32, i32
  }
  func.func @transform_7(%arg0: i32) -> (i32, i32) {
    %c0_i32 = arith.constant 0 : i32
    %c0_i32_0 = arith.constant 0 : i32
    %c0_i32_1 = arith.constant 0 : i32
    return %c0_i32, %c0_i32_0 : i32, i32
  }
  func.func @transform_8(%arg0: i32) -> (i32, i32) {
    %c0_i32 = arith.constant 0 : i32
    %c0_i32_0 = arith.constant 0 : i32
    %c0_i32_1 = arith.constant 0 : i32
    return %c0_i32, %c0_i32_0 : i32, i32
  }
  func.func @transform_9(%arg0: i32) -> (i32, i32) {
    %c0_i32 = arith.constant 0 : i32
    %c0_i32_0 = arith.constant 0 : i32
    return %arg0, %c0_i32 : i32, i32
  }
  func.func @transform_10(%arg0: i32) -> (i32, i32) {
    %c0_i32 = arith.constant 0 : i32
    %c0_i32_0 = arith.constant 0 : i32
    return %arg0, %c0_i32 : i32, i32
  }
  func.func @transform_11(%arg0: i32) -> (i32, i32) {
    %c0_i32 = arith.constant 0 : i32
    %c0_i32_0 = arith.constant 0 : i32
    return %arg0, %c0_i32 : i32, i32
  }
  func.func @transform_12(%arg0: i32) -> (i32, i32) {
    %c0_i32 = arith.constant 0 : i32
    %c0_i32_0 = arith.constant 0 : i32
    return %arg0, %c0_i32 : i32, i32
  }
}

</mosaic_0001>

<bundles_post_ra>
// kernel: tpu_custom_call.1
= control target key start
LH: loop header
LB: loop body
LE: loop exit
PB: predicated region body
PF: predicated region fallthrough
CT: control target
= control target key end

     0   :  { %s2553_s0 = inlined_call_operand.hbm [shape: f32[64,128], index: 0, kind: input, shape index: {}]   ;;  %s2554_s1 = inlined_call_operand.hbm [shape: bf16[128,128], index: 1, kind: input, shape index: {}]   ;;  %s2555_s2 = inlined_call_operand.vmem [shape: f32[1,128], index: 2, kind: input, shape index: {}]   ;;  %s2556_s3 = inlined_call_operand.hbm [shape: bf16[128,128], index: 3, kind: input, shape index: {}]   ;;  %s2557_s4 = inlined_call_operand.vmem [shape: f32[1,128], index: 4, kind: input, shape index: {}]   ;;  %s2558_s5 = inlined_call_operand.hbm [shape: bf16[128,128], index: 5, kind: input, shape index: {}]   ;;  %s2559_s6 = inlined_call_operand.vmem [shape: f32[1,128], index: 6, kind: input, shape index: {}]   ;;  %s2560_s7 = inlined_call_operand.hbm [shape: bf16[128,128], index: 7, kind: input, shape index: {}]   ;;  %s2561_s8 = inlined_call_operand.vmem [shape: f32[1,128], index: 8, kind: input, shape index: {}]   ;;  %s2562_s9 = inlined_call_operand.hbm [shape: f32[64,128], index: 9, kind: input, shape index: {}]   ;;  %s2563_s10 = inlined_call_operand.hbm [shape: f32[64,128], index: 10, kind: output, shape index: {0}]   ;;  %s2564_s11 = inlined_call_operand.hbm [shape: f32[64,128], index: 11, kind: output, shape index: {1}]   ;;  %s2565_s12 = inlined_call_operand.hbm [shape: f32[64,128], index: 12, kind: output, shape index: {2}]  }
   0x1   :  { %2576 = sst [smem:[#allocation25_spill]] %s2553_s0 }
   0x2   :  { %2577 = sst [smem:[#allocation26_spill]] %s2554_s1 }
   0x3   :  { %2578 = sst [smem:[#allocation27_spill]] %s2556_s3 }
   0x4   :  { %2579 = sst [smem:[#allocation28_spill]] %s2561_s8 }
   0x5   :  { %2580 = sst [smem:[#allocation29_spill]] %s2563_s10 }
   0x6   :  { %2581 = sst [smem:[#allocation30_spill]] %s2564_s11 }
   0x7   :  { %2582 = sst [smem:[#allocation31_spill]] %s2565_s12 }
   0x8   :  { %18 = vsyncpa [#allocation3], 0 }
   0x9   :  { %20 = vsyncpa [#allocation3 + $0x1], 0 }
   0xa   :  { %21 = vsyncpa [#allocation6], 0 }
   0xb   :  { %22 = vsyncpa [#allocation9], 0 }
   0xc   :  { %23 = vsyncpa [#allocation12], 0 }
   0xd   :  { %25 = vsyncpa [#allocation12 + $0x1], 0 }
   0xe   :  { %26 = vsyncpa [#allocation4], 0 }
   0xf   :  { %28 = vsyncpa [#allocation4 + $0x1], 0 }
  0x10   :  { %29 = vsyncpa [#allocation15], 0 }
  0x11   :  { %31 = vsyncpa [#allocation15 + $0x1], 0  ;;  %s2074_s21 = smov 0   ;;  %s2076_s22 = smov 0  }
  0x12   :  { %s2078_s23 = smov 0   ;;  %s2080_s24 = smov 0  }
  0x13 LB: > { %2583 = sst [smem:[#allocation23_spill]] %s1980_s21  ;;  %s2095_s25 = sadd.s32 4294967295, %s1992_s24   ;;  %s1992_s24 = sphi %s2080_s24, %s2616_s24   ;;  %s1988_s23 = sphi %s2078_s23, %s2615_s23   ;;  %s1984_s22 = sphi %s2076_s22, %s2614_s22   ;;  %s1980_s21 = sphi %s2074_s21, %s2613_s21  }
  0x14   : > { %s2566_s26 = sadd.s32 4294967294, %s1992_s24   ;;  %p57_p0 = scmp.ne.s32.totalorder %s1984_s22, %s1980_s21 }
  0x15   : > { %p2569_p1 = scmp.eq.s32.totalorder %s2095_s25, 0  ;;  %p281_p3 = scmp.eq.s32.totalorder %s2566_s26, 1 }
  0x16   : > { %p1340_p5 = scmp.ge.s32.totalorder %s1992_s24, 1  ;;  %p340_p7 = scmp.lt.s32.totalorder %s1992_s24, 3 }
  0x17   : > { %p2106_p4 = por %p2569_p1, %p57_p0  ;;  %p2111_p6 = por %p281_p3, %p57_p0 }
  0x18   : > { %p2116_p8 = pnand %p1340_p5, %p340_p7  ;;  %s1994_s30 = smov [#allocation5]  }
  0x19   : > { %s2584_s27 = scalar_select %p2106_p4, 1, 0 }
  0x1a   : > { %s2585_s28 = scalar_select %p2111_p6, 1, 0 }
  0x1b   : > { %s2587_s29 = scalar_select %p2116_p8, 1, 0 }
  0x1c   : > { %2586 = sst [smem:[#allocation24_spill]] %s2585_s28  ;;  %s352_s13 = sshll.u32 %s1994_s30, 4  ;;  %s2120_s13 = int_to_ptr.vmem [resolvable:$true] %s352_s13 }
  0x1d   : > { %p1560_p9 = pneg %p2116_p8  ;;  %s1995_s15 = smov [#allocation8]  }
  0x1e   : > { %s384_s16 = sshll.u32 %s1995_s15, 4  ;;  %s1996_s17 = smov [#allocation7]   ;;  %s2131_s16 = int_to_ptr.vmem [resolvable:$true] %s384_s16 }
  0x1f   : > { %p2127_p11 = pnand %p1560_p9, %p2569_p1  ;;  %s2133_s18 = sshll.u32 %s1996_s17, 4  ;;  %s369_s18 = int_to_ptr.vmem [resolvable:$true] %s2133_s18 }
  0x20   : > { %s2589_s1 = sld [smem:[#allocation26_spill]] }
  0x21   : > { %p2143_p13 = pneg %p2127_p11 }
  0x26   : > { %s1682_s30 = scalar_lea.hbm %s2589_s1, 1024 }
  0x27   : > { %p1683_p12 = scmp.ne.s32.totalorder %s2589_s1, %s1682_s30  ;;  %p1689_p5 = scmp.lt.u32.totalorder %s1682_s30, %s2589_s1 }
  0x29   : > { %p1685_p0 = pnand %p2143_p13, %p1683_p12 }
  0x2b   : > { %p1686_p3 = pneg %p1685_p0 }
  0x2d   : > { %p1691_p7 = pnand %p1689_p5, %p1686_p3 }
  0x2f   : > { %1694 = shalt.err (!%p1691_p7)
}
  0x30   : > { %s1695_s26 = scalar_lea.vmem %s2120_s13, 1024  ;;  %p1703_p2 = scmp.lt.s32.totalorder %s2120_s13, %s2120_s13 }
  0x31   : > { %p1696_p9 = scmp.ne.s32.totalorder %s2120_s13, %s1695_s26  ;;  %p1704_p6 = scmp.lt.s32.totalorder %s1695_s26, %s1695_s26 }
  0x33   : > { %p1698_p10 = pnand %p1696_p9, %p2143_p13  ;;  %p1705_p12 = por %p1704_p6, %p1703_p2 }
  0x35   : > { %p1699_p1 = pneg %p1698_p10 }
  0x37   : > { %p1706_p0 = pnand %p1705_p12, %p1699_p1 }
  0x39   : > { %1709 = shalt.err (!%p1706_p0)
}
  0x3a   : > { %s1997_s28 = smov 64   ;;  %s1998_s19 = smov 4  }
  0x3b   : > { %1563 = dma.hbm_to_vmem [thread:$0]  (!%p2127_p11), %s2589_s1, 1024, %s2120_s13, [#allocation6], %s1997_s28, %s1997_s28, %s1998_s19  }
  0x3c   : > { %s1710_s26 = scalar_lea.hbm %s2558_s5, 1024 }
  0x3d   : > { %p1711_p1 = scmp.ne.s32.totalorder %s2558_s5, %s1710_s26  ;;  %p1717_p10 = scmp.lt.u32.totalorder %s1710_s26, %s2558_s5 }
  0x3f   : > { %p1713_p2 = pnand %p1711_p1, %p2143_p13 }
  0x41   : > { %p1714_p6 = pneg %p1713_p2 }
  0x43   : > { %p1719_p3 = pnand %p1717_p10, %p1714_p6 }
  0x45   : > { %1722 = shalt.err (!%p1719_p3)
}
  0x46   : > { %s1723_s13 = scalar_lea.vmem %s2131_s16, 1024  ;;  %p1731_p12 = scmp.lt.s32.totalorder %s2131_s16, %s2131_s16 }
  0x47   : > { %p1724_p5 = scmp.ne.s32.totalorder %s2131_s16, %s1723_s13  ;;  %p1732_p0 = scmp.lt.s32.totalorder %s1723_s13, %s1723_s13 }
  0x49   : > { %p1726_p7 = pnand %p1724_p5, %p2143_p13  ;;  %p1733_p1 = por %p1732_p0, %p1731_p12 }
  0x4b   : > { %p1727_p9 = pneg %p1726_p7 }
  0x4d   : > { %p1734_p2 = pnand %p1733_p1, %p1727_p9 }
  0x4f   : > { %1737 = shalt.err (!%p1734_p2)
}
  0x50   : > { %1569 = dma.hbm_to_vmem [thread:$0]  (!%p2127_p11), %s2558_s5, 1024, %s2131_s16, [#allocation9], %s1997_s28, %s1997_s28, %s1998_s19  }
  0x51   : > { %s2591_s3 = sld [smem:[#allocation27_spill]] }
  0x57   : > { %s1738_s20 = scalar_lea.hbm %s2591_s3, 1024 }
  0x58   : > { %p1739_p6 = scmp.ne.s32.totalorder %s2591_s3, %s1738_s20  ;;  %p1745_p5 = scmp.lt.u32.totalorder %s1738_s20, %s2591_s3 }
  0x5a   : > { %p1741_p10 = pnand %p1739_p6, %p2143_p13 }
  0x5c   : > { %p1742_p3 = pneg %p1741_p10 }
  0x5e   : > { %p1747_p7 = pnand %p1745_p5, %p1742_p3 }
  0x60   : > { %1750 = shalt.err (!%p1747_p7)
}
  0x61   : > { %s1751_s13 = scalar_lea.vmem %s369_s18, 1024  ;;  %p1759_p1 = scmp.lt.s32.totalorder %s369_s18, %s369_s18 }
  0x62   : > { %p1752_p9 = scmp.ne.s32.totalorder %s369_s18, %s1751_s13  ;;  %p1760_p2 = scmp.lt.s32.totalorder %s1751_s13, %s1751_s13 }
  0x64   : > { %p1754_p12 = pnand %p1752_p9, %p2143_p13  ;;  %p1761_p4 = por %p1760_p2, %p1759_p1 }
  0x66   : > { %p1755_p0 = pneg %p1754_p12 }
  0x68   : > { %p1762_p8 = pnand %p1761_p4, %p1755_p0 }
  0x6a   : > { %1765 = shalt.err (!%p1762_p8)
}
  0x6b   : > { %1566 = dma.hbm_to_vmem [thread:$0]  (!%p2127_p11), %s2591_s3, 1024, %s369_s18, [#allocation6], %s1997_s28, %s1997_s28, %s1998_s19  }
  0x6c   : > { %s1999_s10 = smov [#allocation10]   ;;  %s1766_s30 = scalar_lea.hbm %s2560_s7, 1024 }
  0x6d   : > { %s400_s11 = sshll.u32 %s1999_s10, 4  ;;  %p1767_p4 = scmp.ne.s32.totalorder %s2560_s7, %s1766_s30  ;;  %s401_s11 = int_to_ptr.vmem [resolvable:$true] %s400_s11 }
  0x6e   : > { %p1773_p10 = scmp.lt.u32.totalorder %s1766_s30, %s2560_s7 }
  0x6f   : > { %p1769_p8 = pnand %p1767_p4, %p2143_p13 }
  0x71   : > { %p1770_p6 = pneg %p1769_p8 }
  0x73   : > { %p1775_p3 = pnand %p1773_p10, %p1770_p6 }
  0x75   : > { %1778 = shalt.err (!%p1775_p3)
}
  0x76   : > { %s1779_s18 = scalar_lea.vmem %s401_s11, 1024  ;;  %p1787_p12 = scmp.lt.s32.totalorder %s401_s11, %s401_s11 }
  0x77   : > { %p1780_p5 = scmp.ne.s32.totalorder %s401_s11, %s1779_s18  ;;  %p1788_p0 = scmp.lt.s32.totalorder %s1779_s18, %s1779_s18 }
  0x79   : > { %p1782_p7 = pnand %p1780_p5, %p2143_p13  ;;  %p1789_p1 = por %p1788_p0, %p1787_p12 }
  0x7b   : > { %p1783_p9 = pneg %p1782_p7 }
  0x7d   : > { %p1790_p2 = pnand %p1789_p1, %p1783_p9 }
  0x7f   : > { %1793 = shalt.err (!%p1790_p2)
}
  0x80   : > { %1572 = dma.hbm_to_vmem [thread:$0]  (!%p2127_p11), %s2560_s7, 1024, %s401_s11, [#allocation9], %s1997_s28, %s1997_s28, %s1998_s19  }
  0x81   : > { %s2237_s21 = sadd.s32 1, %s1992_s24   ;;  %s44_s14 = sadd.s32 1, %s1988_s23 }
  0x82   : > { %s41_s10 = ssub.s32 %s1992_s24, %s2237_s21  ;;  %p51_p13 = scmp.ne.s32.totalorder %s1988_s23, %s1984_s22 }
  0x83   : > { %p42_p4 = scmp.eq.s32.totalorder %s41_s10, 0  ;;  %p52_p8 = scmp.eq.s32.totalorder %s1992_s24, 0 }
  0x84   : > { %p2592_p6 = scmp.eq.s32.totalorder %s2095_s25, 1  ;;  %p1594_p3 = scmp.lt.s32.totalorder %s1992_s24, 2 }
  0x85   : > { %s2253_s20 = scalar_select %p42_p4, %s1988_s23, %s44_s14  }
  0x86   : > { %p2247_p10 = por %p2592_p6, %p51_p13  ;;  %p53_p5 = por %p52_p8, %p51_p13 }
  0x87   : > { %s2256_s30 = sand.u32 1, %s1988_s23   ;;  %s1409_s19 = sshll.u32 %s1992_s24, 9 }
  0x88   : > { %s2575_s28 = sshll.u32 %s2256_s30, 5  ;;  %s2594_s0 = sld [smem:[#allocation25_spill]] }
  0x89   : > { %s421_s26 = scalar_lea.vmem [#allocation2], %s2575_s28  ;;  %p2271_p11 = pnand %p1594_p3, %p53_p5 }
  0x8a   : > { %s428_s13 = sshll.u32 %s421_s26, 4  ;;  %s418_s16 = scalar_lea.sflag [#allocation3], %s2256_s30  ;;  %s2269_s13 = int_to_ptr.vmem [resolvable:$true] %s428_s13 }
  0x8b   : > { %p1796_p9 = pneg %p2271_p11 }
  0x8e   : > { %s2265_s17 = scalar_lea.hbm %s2594_s0, %s1409_s19  ;;  %s1799_s11 = scalar_lea.hbm %s2594_s0, 1024 }
  0x8f   : > { %s1794_s8 = scalar_lea.hbm %s2265_s17, 512  ;;  %p1800_p1 = scmp.lt.u32.totalorder %s2265_s17, %s2594_s0 }
  0x90   : > { %p1795_p7 = scmp.ne.s32.totalorder %s2265_s17, %s1794_s8  ;;  %p1801_p2 = scmp.lt.u32.totalorder %s1799_s11, %s1794_s8 }
  0x91   : > { %p1803_p4 = scmp.lt.u32.totalorder %s1794_s8, %s2265_s17 }
  0x92   : > { %p1797_p12 = pnand %p1796_p9, %p1795_p7  ;;  %p1802_p13 = por %p1801_p2, %p1800_p1 }
  0x94   : > { %p1798_p0 = pneg %p1797_p12  ;;  %p1804_p8 = por %p1803_p4, %p1802_p13 }
  0x96   : > { %p1805_p6 = pnand %p1804_p8, %p1798_p0 }
  0x98   : > { %1808 = shalt.err (!%p1805_p6)
}
  0x99   : > { %s1809_s28 = scalar_lea.vmem %s2269_s13, 512  ;;  %s2000_s14 = smov [#allocation2]  }
  0x9a   : > { %p1810_p3 = scmp.ne.s32.totalorder %s2269_s13, %s1809_s28  ;;  %s1814_s10 = sshll.u32 %s2000_s14, 4  ;;  %s1815_s10 = int_to_ptr.vmem [resolvable:$false] %s1814_s10 }
  0x9b   : > { %s1816_s15 = scalar_lea.vmem %s1815_s10, 1024  ;;  %p1817_p12 = scmp.lt.s32.totalorder %s2269_s13, %s1815_s10 }
  0x9c   : > { %p1812_p5 = pnand %p1810_p3, %p1796_p9  ;;  %p1818_p1 = scmp.lt.s32.totalorder %s1816_s15, %s1809_s28 }
  0x9e   : > { %p1813_p7 = pneg %p1812_p5  ;;  %p1819_p2 = por %p1818_p1, %p1817_p12 }
  0xa0   : > { %p1820_p13 = pnand %p1819_p2, %p1813_p7 }
  0xa2   : > { %1823 = shalt.err (!%p1820_p13)
}
  0xa3   : > { %s2001_s8 = smov 128   ;;  %s2002_s11 = smov 8  }
  0xa4   : > { %1576 = dma.hbm_to_vmem [thread:$0]  (!%p2271_p11), %s2265_s17, 512, %s2269_s13, %s418_s16, %s2001_s8, %s2001_s8, %s2002_s11  }
  0xa5   : > { %s2311_s14 = scalar_lea.hbm %s2562_s9, %s1409_s19  ;;  %s2596_s10 = sshll.u32 %s2256_s30, 5 }
  0xa6   : > { %s442_s15 = scalar_lea.vmem [#allocation11], %s2596_s10  ;;  %s439_s1 = scalar_lea.sflag [#allocation12], %s2256_s30 }
  0xa7   : > { %s449_s0 = sshll.u32 %s442_s15, 4  ;;  %s1824_s3 = scalar_lea.hbm %s2311_s14, 512  ;;  %s2315_s0 = int_to_ptr.vmem [resolvable:$true] %s449_s0 }
  0xa8   : > { %p1825_p0 = scmp.ne.s32.totalorder %s2311_s14, %s1824_s3  ;;  %s1829_s19 = scalar_lea.hbm %s2562_s9, 1024 }
  0xa9   : > { %p1830_p6 = scmp.lt.u32.totalorder %s2311_s14, %s2562_s9  ;;  %p1831_p3 = scmp.lt.u32.totalorder %s1829_s19, %s1824_s3 }
  0xaa   : > { %p1827_p4 = pnand %p1825_p0, %p1796_p9  ;;  %p1833_p7 = scmp.lt.u32.totalorder %s1824_s3, %s2311_s14 }
  0xab   : > { %p1832_p5 = por %p1831_p3, %p1830_p6 }
  0xac   : > { %p1828_p8 = pneg %p1827_p4 }
  0xad   : > { %p1834_p12 = por %p1833_p7, %p1832_p5 }
  0xaf   : > { %p1835_p1 = pnand %p1834_p12, %p1828_p8 }
  0xb1   : > { %1838 = shalt.err (!%p1835_p1)
}
  0xb2   : > { %s1839_s26 = scalar_lea.vmem %s2315_s0, 512  ;;  %s2003_s10 = smov [#allocation11]  }
  0xb3   : > { %p1840_p2 = scmp.ne.s32.totalorder %s2315_s0, %s1839_s26  ;;  %s1844_s15 = sshll.u32 %s2003_s10, 4  ;;  %s1845_s15 = int_to_ptr.vmem [resolvable:$false] %s1844_s15 }
  0xb4   : > { %s1846_s17 = scalar_lea.vmem %s1845_s15, 1024  ;;  %p1847_p4 = scmp.lt.s32.totalorder %s2315_s0, %s1845_s15 }
  0xb5   : > { %p1842_p13 = pnand %p1840_p2, %p1796_p9  ;;  %p1848_p6 = scmp.lt.s32.totalorder %s1846_s17, %s1839_s26 }
  0xb7   : > { %p1843_p0 = pneg %p1842_p13  ;;  %p1849_p3 = por %p1848_p6, %p1847_p4 }
  0xb9   : > { %p1850_p5 = pnand %p1849_p3, %p1843_p0 }
  0xbb   : > { %1853 = shalt.err (!%p1850_p5)
}
  0xbc   : > { %1579 = dma.hbm_to_vmem [thread:$0]  (!%p2271_p11), %s2311_s14, 512, %s2315_s0, %s439_s1, %s2001_s8, %s2001_s8, %s2002_s11  }
  0xbd   : > { %p2597_p9 = scmp.ne.s32.totalorder %s2587_s29, 0 }
  0xbe   : > { %s2349_s3 = sand.u32 (!%p2597_p9), 1, %s1984_s22   ;;  %p2598_p8 = scmp.ne.s32.totalorder (!%p2597_p9), %s2584_s27, 0 }
  0xbf   : > { %461 = sbr.rel (%p2597_p9) target bundleno = 969 (0x3c9), region = 60  ;;  %s2352_s13 = sshll.u32 (!%p2597_p9), %s2349_s3, 5 }
  0xc0   : > { %s464_s18 = scalar_lea.sflag (!%p2597_p9), [#allocation3], %s2349_s3  ;;  %s2356_s19 = scalar_lea.vmem (!%p2597_p9), [#allocation2], %s2352_s13 }
  0xc6   : > { %1955 = dma.done.wait (%p2598_p8), %s464_s18, 512  }
  0xc7   : > { %1957 = vsyncadd (%p2598_p8), %s464_s18, 4294966784  ;;  %p2599_p11 = scmp.eq.s32.totalorder %s2095_s25, 0 }
  0xc9   : > { %1959 = dma.done.wait (%p2599_p11), [#allocation6], 2048   ;;  %p2600_p7 = pmov %p2599_p11 }
  0xcb   : > { %1961 = vsyncadd (%p2600_p7), [#allocation6], 4294965248  ;;  %p2601_p12 = pmov %p2600_p7 }
  0xcc   : > { %p2602_p1 = pmov %p2600_p7 }
  0xcd   : > { %1963 = dma.done.wait (%p2601_p12), [#allocation9], 2048  }
  0xce   : > { %1965 = vsyncadd (%p2602_p1), [#allocation9], 4294965248  ;;  %s489_s0 = scalar_lea.sflag [#allocation12], %s2349_s3  ;;  %s2372_s1 = scalar_lea.vmem [#allocation11], %s2352_s13 }
  0xcf   : > { %1967 = dma.done.wait (%p2598_p8), %s489_s0, 512  }
  0xd0   : > { %1969 = vsyncadd (%p2598_p8), %s489_s0, 4294966784  ;;  %v1642_v0 = vld [vmem:[#allocation5] sm:$0xff]   ;;  %v1643_v1 = vld [vmem:[#allocation5 + $0x8] sm:$0xff]   ;;  %s2603_s26 = sld [smem:[#allocation28_spill]]  ;;  %s2395_s10 = scalar_lea.vmem [#allocation14], %s2352_s13 }
  0xd1   : > { %1454 = vmatprep.subr.bf16.mxu0 %v1642_v0  ;;  %v1644_v2 = vld [vmem:[#allocation5 + $0x10] sm:$0xff]   ;;  %v1645_v3 = vld [vmem:[#allocation5 + $0x18] sm:$0xff]   ;;  %v554_v4 = vld [vmem:[%s2356_s19] sm:$0xff]  ;;  %s1128_s15 = sshll.u32 %s2395_s10, 4  ;;  %s1093_s17 = sand.u32 1, %s2095_s25   ;;  %s2404_s15 = int_to_ptr.vmem [resolvable:$true] %s1128_s15 }
  0xd2   : > { %1455 = vmatpush3.bf16.msra.mxu0 %v1642_v0  ;;  %v555_v5 = vld [vmem:[%s2356_s19 + $0x8] sm:$0xff]  ;;  %v1650_v7 = vld [vmem:[#allocation7] sm:$0xff]   ;;  %v1652_v10 = vld [vmem:[#allocation7 + $0x10] sm:$0xff]   ;;  %s2402_s18 = sshll.u32 %s2095_s25, 9  ;;  %s2604_s30 = sld [smem:[#allocation30_spill]] }
  0xd3   : > { %1456 = vmatprep.subr.bf16.mxu0 %v1643_v1  ;;  %v575_v6 = vpack.c.bf16 %v555_v5, %v554_v4  ;;  %v1651_v8 = vld [vmem:[#allocation7 + $0x8] sm:$0xff]   ;;  %v1646_v9 = vld [vmem:[#allocation5 + $0x20] sm:$0xff]   ;;  %1474 = vmatprep.subr.bf16.mxu1 %v1650_v7  ;;  %v1653_v12 = vld [vmem:[#allocation7 + $0x18] sm:$0xff]   ;;  %s2605_s16 = sld [smem:[#allocation31_spill]]  ;;  %s1854_s27 = scalar_lea.vmem %s2404_s15, 512 }
  0xd4   : > { %1475 = vmatpush3.bf16.msra.mxu1 %v1650_v7  ;;  %v1647_v11 = vld [vmem:[#allocation5 + $0x28] sm:$0xff]   ;;  %v1648_v13 = vld [vmem:[#allocation5 + $0x30] sm:$0xff]   ;;  %v1654_v14 = vld [vmem:[#allocation7 + $0x20] sm:$0xff]   ;;  %p1855_p2 = scmp.ne.s32.totalorder %s2404_s15, %s1854_s27  ;;  %s2004_s29 = smov [#allocation14]  }
  0xd5   : > { %1470 = vmatprep.mubr.bf16.mxu0 %v575_v6  ;;  %1476 = vmatprep.subr.bf16.mxu1 %v1651_v8  ;;  %v1649_v15 = vld [vmem:[#allocation5 + $0x38] sm:$0xff]   ;;  %v1655_v16 = vld [vmem:[#allocation7 + $0x28] sm:$0xff]   ;;  %v556_v17 = vld [vmem:[%s2356_s19 + $0x10] sm:$0xff]  ;;  %s1858_s11 = sshll.u32 %s2004_s29, 4  ;;  %s1859_s11 = int_to_ptr.vmem [resolvable:$false] %s1858_s11 }
  0xd6   : > { %1457 = vmatpush3.bf16.msra.mxu0 %v1643_v1  ;;  %v557_v18 = vld [vmem:[%s2356_s19 + $0x18] sm:$0xff]  ;;  %v1656_v20 = vld [vmem:[#allocation7 + $0x30] sm:$0xff]   ;;  %v1658_v22 = vld [vmem:[#allocation8] sm:$0xff]   ;;  %s547_s19 = scalar_lea.vmem [#allocation16], %s2352_s13  ;;  %p1856_p13 = pnand %p1855_p2, %p2247_p10 }
  0xd7   : > { %1458 = vmatprep.subr.bf16.mxu0 %v1644_v2  ;;  %v576_v19 = vpack.c.bf16 %v557_v18, %v556_v17  ;;  %v1657_v21 = vld [vmem:[#allocation7 + $0x38] sm:$0xff]   ;;  %v1659_v23 = vld [vmem:[#allocation10] sm:$0xff]   ;;  %v1660_v24 = vld [vmem:[#allocation8 + $0x8] sm:$0xff]   ;;  %s1144_s0 = sshll.u32 %s547_s19, 4  ;;  %s1860_s14 = scalar_lea.vmem %s1859_s11, 1024  ;;  %s2423_s0 = int_to_ptr.vmem [resolvable:$true] %s1144_s0 }
  0xd8   : > { %1477 = vmatpush3.bf16.msra.mxu1 %v1651_v8  ;;  %v1662_v25 = vld [vmem:[#allocation8 + $0x10] sm:$0xff]   ;;  %v1664_v26 = vld [vmem:[#allocation8 + $0x18] sm:$0xff]   ;;  %v1666_v27 = vld [vmem:[#allocation8 + $0x20] sm:$0xff]   ;;  %s2421_s8 = scalar_lea.hbm %s2604_s30, %s2402_s18  ;;  %p1857_p0 = pneg %p1856_p13 }
  0xd9   : > { %1478 = vmatprep.subr.bf16.mxu1 %v1652_v10  ;;  %v1668_v28 = vld [vmem:[#allocation8 + $0x28] sm:$0xff]   ;;  %v1362_v29 = vld [vmem:[%s2555_s2] ss:$0 sm:$0xff]  ;;  %v1663_v45 = vld [vmem:[#allocation10 + $0x10] sm:$0xff]   ;;  %s2431_s28 = scalar_lea.hbm %s2605_s16, %s2402_s18  ;;  %p1861_p4 = scmp.lt.s32.totalorder %s2404_s15, %s1859_s11 }
  0xda   : > { %1459 = vmatpush3.bf16.msra.mxu0 %v1644_v2  ;;  %v1661_v44 = vld [vmem:[#allocation10 + $0x8] sm:$0xff]   ;;  %v1665_v46 = vld [vmem:[#allocation10 + $0x18] sm:$0xff]   ;;  %v1667_v47 = vld [vmem:[#allocation10 + $0x20] sm:$0xff]   ;;  %p1862_p6 = scmp.lt.s32.totalorder %s1860_s14, %s1854_s27 }
  0xdb   : > { %1460 = vmatprep.subr.bf16.mxu0 %v1645_v3  ;;  %v1669_v48 = vld [vmem:[#allocation10 + $0x28] sm:$0xff]   ;;  %v1670_v49 = vld [vmem:[#allocation8 + $0x30] sm:$0xff]   ;;  %v1672_v51 = vld [vmem:[#allocation8 + $0x38] sm:$0xff]  }
  0xdc   : > { %1479 = vmatpush3.bf16.msra.mxu1 %v1652_v10  ;;  %v1671_v50 = vld [vmem:[#allocation10 + $0x30] sm:$0xff]   ;;  %v1673_v52 = vld [vmem:[#allocation10 + $0x38] sm:$0xff]   ;;  %v1371_v53 = vld [vmem:[%s2557_s4] ss:$0 sm:$0xff]  ;;  %p1863_p3 = por %p1862_p6, %p1861_p4 }
  0xdd   : > { %1480 = vmatprep.subr.bf16.mxu1 %v1653_v12  ;;  %v1380_v4 = vld [vmem:[%s2559_s6] ss:$0 sm:$0xff] }
  0xde   : > { %1461 = vmatpush3.bf16.msra.mxu0 %v1645_v3  ;;  %v1389_v5 = vld [vmem:[%s2603_s26] ss:$0 sm:$0xff]  ;;  %s2437_s26 = scalar_lea.sflag [#allocation15], %s1093_s17  ;;  %p1864_p5 = pnand %p1863_p3, %p1857_p0 }
  0xdf   : > { %1462 = vmatprep.subr.bf16.mxu0 %v1646_v9 }
  0xe0   : > { %1481 = vmatpush3.bf16.msra.mxu1 %v1653_v12 }
  0xe1   : > { %1482 = vmatprep.subr.bf16.mxu1 %v1654_v14 }
  0xe2   : > { %1463 = vmatpush3.bf16.msra.mxu0 %v1646_v9 }
  0xe3   : > { %1464 = vmatprep.subr.bf16.mxu0 %v1647_v11 }
  0xe4   : > { %1483 = vmatpush3.bf16.msra.mxu1 %v1654_v14 }
  0xe5   : > { %1484 = vmatprep.subr.bf16.mxu1 %v1655_v16 }
  0xe6   : > { %1465 = vmatpush3.bf16.msra.mxu0 %v1647_v11 }
  0xe7   : > { %1466 = vmatprep.subr.bf16.mxu0 %v1648_v13 }
  0xe8   : > { %1485 = vmatpush3.bf16.msra.mxu1 %v1655_v16 }
  0xe9   : > { %1486 = vmatprep.subr.bf16.mxu1 %v1656_v20 }
  0xea   : > { %1467 = vmatpush3.bf16.msra.mxu0 %v1648_v13 }
  0xeb   : > { %1468 = vmatprep.subr.bf16.mxu0 %v1649_v15 }
  0xec   : > { %1487 = vmatpush3.bf16.msra.mxu1 %v1656_v20 }
  0xed   : > { %1488 = vmatprep.subr.bf16.mxu1 %v1657_v21 }
  0xee   : > { %1469 = vmatpush3.bf16.msra.mxu0 %v1649_v15 }
  0xef   : > { %1494 = vmatprep.subr.bf16.mxu0 %v1658_v22 }
  0xf0   : > { %1489 = vmatpush3.bf16.msra.mxu1 %v1657_v21 }
  0xf1   : > { %1471 = vmatmul.mubr.bf16.vlgmr.msra.gmra.mrb[0].mxu0 %v576_v19  ;;  %1514 = vmatprep.subr.bf16.mxu1 %v1659_v23 }
  0xf2   : > { %1495 = vmatpush3.bf16.msra.mxu0 %v1658_v22 }
  0xf3   : > { %1496 = vmatprep.subr.bf16.mxu0 %v1660_v24 }
  0xf6   : > { %1497 = vmatpush3.bf16.msra.mxu0 %v1660_v24 }
  0xf7   : > { %1498 = vmatprep.subr.bf16.mxu0 %v1662_v25 }
  0xfa   : > { %1499 = vmatpush3.bf16.msra.mxu0 %v1662_v25 }
  0xfb   : > { %1500 = vmatprep.subr.bf16.mxu0 %v1664_v26 }
  0xfe   : > { %1501 = vmatpush3.bf16.msra.mxu0 %v1664_v26 }
  0xff   : > { %1502 = vmatprep.subr.bf16.mxu0 %v1666_v27 }
 0x102   : > { %1503 = vmatpush3.bf16.msra.mxu0 %v1666_v27 }
 0x103   : > { %1504 = vmatprep.subr.bf16.mxu0 %v1668_v28 }
 0x106   : > { %1505 = vmatpush3.bf16.msra.mxu0 %v1668_v28 }
 0x107   : > { %1506 = vmatprep.subr.bf16.mxu0 %v1670_v49 }
 0x10a   : > { %1507 = vmatpush3.bf16.msra.mxu0 %v1670_v49 }
 0x10b   : > { %1508 = vmatprep.subr.bf16.mxu0 %v1672_v51 }
 0x10e   : > { %1509 = vmatpush3.bf16.msra.mxu0 %v1672_v51 }
 0x1c4   : > { %v1472_v30 = vpop.f32.mrb[0].mxu0 }
 0x1c5   : > { %v674_v31 = vadd.f32 %v1472_v30, %v1362_v29  ;;  %v665_v32 = vpop.f32.mrb[1].mxu0 }
 0x1c6   : > { %v666_v33 = vadd.f32 %v1362_v29, %v665_v32  ;;  %v1473_v34 = vpop.f32.mrb[2].mxu0 }
 0x1c7   : > { %v677_v35 = vadd.f32 %v1473_v34, %v1362_v29  ;;  %v668_v36 = vpop.f32.mrb[3].mxu0  ;;  %v682_v38 = vmax.f32 %v674_v31, 0.0 }
 0x1c8   : > { %v669_v37 = vadd.f32 %v1362_v29, %v668_v36  ;;  %v680_v40 = vmax.f32 %v666_v33, 0.0 }
 0x1c9   : > { %v683_v39 = vmax.f32 %v677_v35, 0.0 }
 0x1ca   : > { %v681_v41 = vmax.f32 %v669_v37, 0.0 }
 0x1cb   : > { %v702_v42 = vpack.c.bf16 %v683_v39, %v682_v38 }
 0x1cc   : > { %v701_v43 = vpack.c.bf16 %v681_v41, %v680_v40 }
 0x1ce   : > { %1490 = vmatprep.mubr.bf16.mxu1 %v701_v43 }
 0x1cf   : > { %1491 = vmatmul.mubr.bf16.vlgmr.msra.gmra.mrb[0].mxu1 %v702_v42 }
 0x1d0   : > { %1515 = vmatpush3.bf16.msra.mxu1 %v1659_v23 }
 0x1d1   : > { %1516 = vmatprep.subr.bf16.mxu1 %v1661_v44 }
 0x1d4   : > { %1517 = vmatpush3.bf16.msra.mxu1 %v1661_v44 }
 0x1d5   : > { %1518 = vmatprep.subr.bf16.mxu1 %v1663_v45 }
 0x1d8   : > { %1519 = vmatpush3.bf16.msra.mxu1 %v1663_v45 }
 0x1d9   : > { %1520 = vmatprep.subr.bf16.mxu1 %v1665_v46 }
 0x1dc   : > { %1521 = vmatpush3.bf16.msra.mxu1 %v1665_v46 }
 0x1dd   : > { %1522 = vmatprep.subr.bf16.mxu1 %v1667_v47 }
 0x1e0   : > { %1523 = vmatpush3.bf16.msra.mxu1 %v1667_v47 }
 0x1e1   : > { %1524 = vmatprep.subr.bf16.mxu1 %v1669_v48 }
 0x1e4   : > { %1525 = vmatpush3.bf16.msra.mxu1 %v1669_v48 }
 0x1e5   : > { %1526 = vmatprep.subr.bf16.mxu1 %v1671_v50 }
 0x1e8   : > { %1527 = vmatpush3.bf16.msra.mxu1 %v1671_v50 }
 0x1e9   : > { %1528 = vmatprep.subr.bf16.mxu1 %v1673_v52 }
 0x1ec   : > { %1529 = vmatpush3.bf16.msra.mxu1 %v1673_v52 }
 0x2a2   : > { %v1492_v54 = vpop.f32.mrb[0].mxu1 }
 0x2a3   : > { %v800_v55 = vadd.f32 %v1492_v54, %v1371_v53  ;;  %v791_v56 = vpop.f32.mrb[1].mxu1 }
 0x2a4   : > { %v792_v57 = vadd.f32 %v1371_v53, %v791_v56  ;;  %v1493_v58 = vpop.f32.mrb[2].mxu1 }
 0x2a5   : > { %v803_v59 = vadd.f32 %v1493_v58, %v1371_v53  ;;  %v794_v60 = vpop.f32.mrb[3].mxu1  ;;  %v808_v62 = vmax.f32 %v800_v55, 0.0 }
 0x2a6   : > { %v795_v61 = vadd.f32 %v1371_v53, %v794_v60  ;;  %v806_v0 = vmax.f32 %v792_v57, 0.0 }
 0x2a7   : > { %v809_v63 = vmax.f32 %v803_v59, 0.0 }
 0x2a8   : > { %v807_v1 = vmax.f32 %v795_v61, 0.0 }
 0x2a9   : > { %v849_v2 = vpack.c.bf16 %v809_v63, %v808_v62 }
 0x2aa   : > { %v848_v3 = vpack.c.bf16 %v807_v1, %v806_v0 }
 0x2ac   : > { %1510 = vmatprep.mubr.bf16.mxu0 %v848_v3  ;;  %1530 = vmatprep.mubr.bf16.mxu1 %v848_v3 }
 0x2ad   : > { %1511 = vmatmul.mubr.bf16.vlgmr.msra.gmra.mrb[4].mxu0 %v849_v2  ;;  %1531 = vmatmul.mubr.bf16.vlgmr.msra.gmra.mrb[4].mxu1 %v849_v2 }
 0x380   : > { %v1512_v6 = vpop.f32.mrb[4].mxu0  ;;  %v1532_v7 = vpop.f32.mrb[4].mxu1 }
 0x381   : > { %v2399_v8 = vadd.f32 %v1512_v6, %v1380_v4  ;;  %v1050_v9 = vadd.f32 %v1532_v7, %v1389_v5  ;;  %v938_v10 = vpop.f32.mrb[5].mxu0  ;;  %v1041_v11 = vpop.f32.mrb[5].mxu1 }
 0x382   : > { %v2407_v12 = vadd.f32 %v1380_v4, %v938_v10  ;;  %v1042_v13 = vadd.f32 %v1389_v5, %v1041_v11  ;;  %v1513_v14 = vpop.f32.mrb[6].mxu0  ;;  %v1533_v15 = vpop.f32.mrb[6].mxu1 }
 0x383   : > { %1082 = vst [vmem:[%s2395_s10 + $0x10] sm:$0xff] %v2399_v8  ;;  %v1058_v16 = vmul.f32 0.5, %v1050_v9  ;;  %1086 = vst [vmem:[%s547_s19 + $0x10] sm:$0xff] %v1050_v9  ;;  %v2411_v17 = vadd.f32 %v1513_v14, %v1380_v4  ;;  %v1053_v18 = vadd.f32 %v1533_v15, %v1389_v5  ;;  %v941_v19 = vpop.f32.mrb[7].mxu0  ;;  %v1044_v20 = vpop.f32.mrb[7].mxu1 }
 0x384   : > { %1080 = vst [vmem:[%s2395_s10] sm:$0xff] %v2407_v12  ;;  %v1056_v21 = vmul.f32 0.5, %v1042_v13  ;;  %1084 = vst [vmem:[%s547_s19] sm:$0xff] %v1042_v13  ;;  %v2415_v22 = vadd.f32 %v1380_v4, %v941_v19  ;;  %v1045_v23 = vadd.f32 %v1389_v5, %v1044_v20 }
 0x385   : > { %v1064_v24 = vmul.f32 1.442695, %v1058_v16  ;;  %1083 = vst [vmem:[%s2395_s10 + $0x18] sm:$0xff] %v2411_v17  ;;  %v1059_v25 = vmul.f32 0.5, %v1053_v18  ;;  %1087 = vst [vmem:[%s547_s19 + $0x18] sm:$0xff] %v1053_v18 }
 0x386   : > { %v1060_v26 = vmul.f32 1.442695, %v1056_v21  ;;  %1081 = vst [vmem:[%s2395_s10 + $0x8] sm:$0xff] %v2415_v22  ;;  %v1057_v27 = vmul.f32 0.5, %v1045_v23  ;;  %1085 = vst [vmem:[%s547_s19 + $0x8] sm:$0xff] %v1045_v23 }
 0x387   : > { %1674 = vpow2.f32 %v1064_v24  ;;  %v1066_v28 = vmul.f32 1.442695, %v1059_v25 }
 0x388   : > { %1867 = shalt.err (!%p1864_p5)
}
 0x389   : > { %s1868_s25 = scalar_lea.hbm %s2421_s8, 512  ;;  %s1872_s19 = scalar_lea.hbm %s2604_s30, 1024 }
 0x38a   : > { %p1869_p9 = scmp.ne.s32.totalorder %s2421_s8, %s1868_s25  ;;  %p1873_p7 = scmp.lt.u32.totalorder %s2421_s8, %s2604_s30 }
 0x38b   : > { %p1874_p12 = scmp.lt.u32.totalorder %s1872_s19, %s1868_s25  ;;  %p1876_p2 = scmp.lt.u32.totalorder %s1868_s25, %s2421_s8 }
 0x38c   : > { %p1870_p8 = pnand %p1869_p9, %p2247_p10 }
 0x38d   : > { %p1875_p1 = por %p1874_p12, %p1873_p7 }
 0x38e   : > { %p1871_p11 = pneg %p1870_p8 }
 0x38f   : > { %p1877_p13 = por %p1876_p2, %p1875_p1 }
 0x391   : > { %p1878_p0 = pnand %p1877_p13, %p1871_p11 }
 0x393   : > { %1881 = shalt.err (!%p1878_p0)
}
 0x394   : > { %s2005_s27 = smov 128   ;;  %s2006_s14 = smov 8   ;;  %1676 = vpow2.f32 %v1060_v26  ;;  %v1062_v29 = vmul.f32 1.442695, %v1057_v27 }
 0x395   : > { %1555 = dma.vmem_to_hbm [thread:$0]  (%p2247_p10), %s2404_s15, 512, %s2421_s8, %s2437_s26, %s2005_s27, %s2005_s27, %s2006_s14  }
 0x396   : > { %s1882_s25 = scalar_lea.vmem %s2423_s0, 512  ;;  %s2007_s10 = smov [#allocation16]  }
 0x397   : > { %p1883_p4 = scmp.ne.s32.totalorder %s2423_s0, %s1882_s25  ;;  %s1886_s17 = sshll.u32 %s2007_s10, 4  ;;  %s1887_s17 = int_to_ptr.vmem [resolvable:$false] %s1886_s17 }
 0x398   : > { %s1888_s19 = scalar_lea.vmem %s1887_s17, 1024  ;;  %p1889_p5 = scmp.lt.s32.totalorder %s2423_s0, %s1887_s17 }
 0x399   : > { %p1884_p6 = pnand %p1883_p4, %p2247_p10  ;;  %p1890_p9 = scmp.lt.s32.totalorder %s1888_s19, %s1882_s25 }
 0x39b   : > { %p1885_p3 = pneg %p1884_p6  ;;  %p1891_p8 = por %p1890_p9, %p1889_p5 }
 0x39d   : > { %p1892_p11 = pnand %p1891_p8, %p1885_p3 }
 0x39f   : > { %1895 = shalt.err (!%p1892_p11)
}
 0x3a0   : > { %s1896_s15 = scalar_lea.hbm %s2431_s28, 512  ;;  %s1900_s11 = scalar_lea.hbm %s2605_s16, 1024 }
 0x3a1   : > { %p1897_p7 = scmp.ne.s32.totalorder %s2431_s28, %s1896_s15  ;;  %p1901_p2 = scmp.lt.u32.totalorder %s2431_s28, %s2605_s16 }
 0x3a2   : > { %p1902_p13 = scmp.lt.u32.totalorder %s1900_s11, %s1896_s15  ;;  %p1904_p4 = scmp.lt.u32.totalorder %s1896_s15, %s2431_s28 }
 0x3a3   : > { %p1898_p12 = pnand %p1897_p7, %p2247_p10 }
 0x3a4   : > { %p1903_p0 = por %p1902_p13, %p1901_p2 }
 0x3a5   : > { %p1899_p1 = pneg %p1898_p12 }
 0x3a6   : > { %p1905_p6 = por %p1904_p4, %p1903_p0 }
 0x3a8   : > { %p1906_p3 = pnand %p1905_p6, %p1899_p1 }
 0x3aa   : > { %1909 = shalt.err (!%p1906_p3)
}
 0x3ab   : > { %1556 = dma.vmem_to_hbm [thread:$0]  (%p2247_p10), %s2423_s0, 512, %s2431_s28, %s2437_s26, %s2005_s27, %s2005_s27, %s2006_s14   ;;  %1678 = vpow2.f32 %v1066_v28  ;;  %v1675_v32 = vpop.eup %1674 }
 0x3ac   : > { %1680 = vpow2.f32 %v1062_v29  ;;  %v846_v30 = vld [vmem:[%s2372_s1 + $0x10] sm:$0xff]  ;;  %v844_v31 = vld [vmem:[%s2372_s1] sm:$0xff]  ;;  %v847_v33 = vld [vmem:[%s2372_s1 + $0x18] sm:$0xff]  ;;  %v1677_v34 = vpop.eup %1676  ;;  %s533_s25 = scalar_lea.vmem [#allocation13], %s2352_s13  ;;  %s2606_s26 = sld [smem:[#allocation29_spill]] }
 0x3ad   : > { %v1070_v35 = vmul.f32 %v1675_v32, %v846_v30  ;;  %v845_v36 = vld [vmem:[%s2372_s1 + $0x8] sm:$0xff]  ;;  %v1068_v38 = vmul.f32 %v1677_v34, %v844_v31  ;;  %s1112_s0 = sshll.u32 %s533_s25, 4  ;;  %s1089_s13 = scalar_lea.sflag [#allocation4], %s2349_s3  ;;  %s2504_s0 = int_to_ptr.vmem [resolvable:$true] %s1112_s0 }
 0x3ae   : > { %s1910_s15 = scalar_lea.vmem %s2504_s0, 512  ;;  %s2008_s8 = smov [#allocation13]  }
 0x3af   : > { %v1074_v40 = vadd.f32 %v1070_v35, %v2399_v8  ;;  %v1072_v42 = vadd.f32 %v1068_v38, %v2407_v12  ;;  %p1911_p5 = scmp.ne.s32.totalorder %s2504_s0, %s1910_s15  ;;  %s1914_s29 = sshll.u32 %s2008_s8, 4  ;;  %s1915_s29 = int_to_ptr.vmem [resolvable:$false] %s1914_s29 }
 0x3b0   : > { %s1916_s11 = scalar_lea.vmem %s1915_s29, 1024  ;;  %p1917_p11 = scmp.lt.s32.totalorder %s2504_s0, %s1915_s29 }
 0x3b1   : > { %1078 = vst [vmem:[%s533_s25 + $0x10] sm:$0xff] %v1074_v40  ;;  %1076 = vst [vmem:[%s533_s25] sm:$0xff] %v1072_v42  ;;  %p1912_p9 = pnand %p1911_p5, %p2247_p10  ;;  %p1918_p7 = scmp.lt.s32.totalorder %s1916_s11, %s1910_s15 }
 0x3b2   : > { %s2502_s19 = scalar_lea.hbm %s2606_s26, %s2402_s18 }
 0x3b3   : > { %p1913_p8 = pneg %p1912_p9  ;;  %p1919_p12 = por %p1918_p7, %p1917_p11 }
 0x3b5   : > { %v1679_v37 = vpop.eup %1678  ;;  %p1920_p1 = pnand %p1919_p12, %p1913_p8 }
 0x3b6   : > { %v1681_v39 = vpop.eup %1680  ;;  %v1071_v41 = vmul.f32 %v1679_v37, %v847_v33 }
 0x3b7   : > { %v1069_v43 = vmul.f32 %v1681_v39, %v845_v36 }
 0x3b8   : > { %v1075_v44 = vadd.f32 %v1071_v41, %v2411_v17 }
 0x3b9   : > { %v1073_v45 = vadd.f32 %v1069_v43, %v2415_v22 }
 0x3ba   : > { %1079 = vst [vmem:[%s533_s25 + $0x18] sm:$0xff] %v1075_v44 }
 0x3bb   : > { %1077 = vst [vmem:[%s533_s25 + $0x8] sm:$0xff] %v1073_v45 }
 0x3bc   : > { %1923 = shalt.err (!%p1920_p1)
}
 0x3bd   : > { %s1924_s18 = scalar_lea.hbm %s2502_s19, 512  ;;  %s1928_s25 = scalar_lea.hbm %s2606_s26, 1024 }
 0x3be   : > { %p1925_p2 = scmp.ne.s32.totalorder %s2502_s19, %s1924_s18  ;;  %p1929_p4 = scmp.lt.u32.totalorder %s2502_s19, %s2606_s26 }
 0x3bf   : > { %p1930_p6 = scmp.lt.u32.totalorder %s1928_s25, %s1924_s18  ;;  %p1932_p5 = scmp.lt.u32.totalorder %s1924_s18, %s2502_s19 }
 0x3c0   : > { %p1926_p13 = pnand %p1925_p2, %p2247_p10 }
 0x3c1   : > { %p1931_p3 = por %p1930_p6, %p1929_p4 }
 0x3c2   : > { %p1927_p0 = pneg %p1926_p13 }
 0x3c3   : > { %p1933_p9 = por %p1932_p5, %p1931_p3 }
 0x3c5   : > { %p1934_p8 = pnand %p1933_p9, %p1927_p0 }
 0x3c7   : > { %1937 = shalt.err (!%p1934_p8)
}
 0x3c8   : > { %1554 = dma.vmem_to_hbm [thread:$0]  (%p2247_p10), %s2504_s0, 512, %s2502_s19, %s1089_s13, %s2005_s27, %s2005_s27, %s2006_s14  }
 0x3c9 PF: > { %s2607_s15 = sld [smem:[#allocation23_spill]]  ;;  %s2608_s8 = sld [smem:[#allocation24_spill]] }
 0x3ca   : > { %p2610_p7 = scmp.ge.s32.totalorder %s1992_s24, 2 }
 0x3cf   : > { %s1159_s29 = sand.u32 1, %s2607_s15   ;;  %p2609_p11 = scmp.ne.s32.totalorder %s2608_s8, 0 }
 0x3d0   : > { %s1160_s11 = scalar_lea.sflag [#allocation4], %s1159_s29 }
 0x3d1   : > { %p1581_p12 = pnand %p2610_p7, %p2609_p11 }
 0x3d3   : > { %1971 = dma.done.wait (!%p1581_p12), %s1160_s11, 512  }
 0x3d4   : > { %1973 = vsyncadd (!%p1581_p12), %s1160_s11, 4294966784  ;;  %s2611_s12 = sadd.s32 4294967294, %s1992_s24  }
 0x3d5   : > { %s1168_s18 = sand.u32 1, %s2611_s12  }
 0x3d6   : > { %s1169_s10 = scalar_lea.sflag [#allocation15], %s1168_s18 }
 0x3d7   : > { %1975 = dma.done.wait (!%p1581_p12), %s1169_s10, 1024  }
 0x3d8   : > { %1977 = vsyncadd (!%p1581_p12), %s1169_s10, 4294966272  ;;  %s2612_s3 = smov %s2237_s21  ;;  %p34_p10 = scmp.ge.s32.totalorder %s2237_s21, 4  }
 0x3d9   : > { %s2613_s21 = smov %s1984_s22  ;;  %s2614_s22 = smov %s1988_s23 }
 0x3da   : > { %s2615_s23 = smov %s2253_s20  ;;  %s2616_s24 = smov %s2612_s3 }
 0x3db   :  { %36 = sbr.rel (!%p34_p10) target bundleno = 19 (0x13), region = 166 }
 0x3e2   :  { %1183 = vsyncpa [#allocation3], 1 }
 0x3e3   :  { %1185 = vsyncpa [#allocation3 + $0x1], 1 }
 0x3e4   :  { %1186 = vsyncpa [#allocation6], 1 }
 0x3e5   :  { %1187 = vsyncpa [#allocation9], 1 }
 0x3e6   :  { %1188 = vsyncpa [#allocation12], 1 }
 0x3e7   :  { %1190 = vsyncpa [#allocation12 + $0x1], 1 }
 0x3e8   :  { %1191 = vsyncpa [#allocation4], 1 }
 0x3e9   :  { %1193 = vsyncpa [#allocation4 + $0x1], 1 }
 0x3ea   :  { %1194 = vsyncpa [#allocation15], 1 }
 0x3eb   :  { %1196 = vsyncpa [#allocation15 + $0x1], 1 }

</bundles_post_ra>
